<compile_context>
chip_gen: v7x
topology: tpu7x:2x2x1
jax: 0.10.0
libtpu: 0.0.40
codegen_flags: <defaults>
</compile_context>

<pallas_src>
import jax
import jax.numpy as jnp
from jax import lax
from jax.experimental import pallas as pl
from jax.experimental.pallas import tpu as pltpu


def _attn_kernel(q_ref, k_ref, v_ref, o_ref, acc_ref):
    # grid = (B*H, num_q_tiles, num_k_tiles); last axis is the Sk reduction.
    sk = pl.program_id(2)

    @pl.when(sk == 0)
    def _init():
        acc_ref[...] = jnp.zeros_like(acc_ref)

    q = q_ref[...]          # (TQ, D)
    k = k_ref[...]          # (TK, D)
    v = v_ref[...]          # (TK, Dv)

    # attn = q @ k^T expressed as a contraction over D for both operands
    # (feeds the MXU directly, no XLU transpose of the k tile).
    attn = lax.dot_general(
        q, k,
        dimension_numbers=(((1,), (1,)), ((), ())),
        preferred_element_type=jnp.float32,
    )
    # Second matmul: keep MXU operands in the input dtype; accumulate across
    # Sk tiles in the resident f32 scratch.
    acc_ref[...] += lax.dot_general(
        attn.astype(v.dtype), v,
        dimension_numbers=(((1,), (0,)), ((), ())),
        preferred_element_type=jnp.float32,
    )

    @pl.when(sk == pl.num_programs(2) - 1)
    def _finalize():
        o_ref[...] = acc_ref[...].astype(o_ref.dtype)


def _pick_tile(dim, preferred):
    """Largest power-of-two tile <= preferred that divides `dim` (>= 8);
    otherwise fall back to the full dimension (always a legal block shape)."""
    t = preferred
    while t >= 8:
        if dim % t == 0:
            return t
        t //= 2
    return dim


def _vmem_bytes(tq, tk, d, dv, itemsize):
    # double-buffered q/k/v/out blocks + f32 accumulator
    return 2 * (tq * d + tk * d + tk * dv + tq * dv) * itemsize + tq * dv * 4


def dot_product_attention(q, k, v, *, tq=512, tk=512,
                          vmem_budget=40 * 1024 * 1024):
    """Pallas equivalent of:  th.matmul(th.matmul(q, k.transpose(2, 3)), v)."""
    B, H, Sq, D = q.shape
    _, _, Sk, Dk = k.shape
    Dv = v.shape[-1]
    assert Dk == D and k.shape[:2] == (B, H)
    assert v.shape[:3] == (B, H, Sk)

    TQ = _pick_tile(Sq, tq)
    TK = _pick_tile(Sk, tk)

    # Shrink power-of-two tiles if the estimated VMEM footprint is too large
    # (only relevant for very large head dims; halving a power-of-two divisor
    # preserves divisibility).
    itemsize = q.dtype.itemsize
    while _vmem_bytes(TQ, TK, D, Dv, itemsize) > vmem_budget:
        if TK >= 16 and Sk % (TK // 2) == 0:
            TK //= 2
        elif TQ >= 16 and Sq % (TQ // 2) == 0:
            TQ //= 2
        else:
            break

    BH = B * H
    grid = (BH, Sq // TQ, Sk // TK)

    # Fuse batch and heads (free, contiguous reshape) -> simpler 3-D layout.
    q3 = q.reshape(BH, Sq, D)
    k3 = k.reshape(BH, Sk, D)
    v3 = v.reshape(BH, Sk, Dv)

    # TODO(synk): if Dv < 128 for real workloads, fold several heads into the
    # lane dim of the output block to avoid masked partial stores.

    flops = 2 * B * H * Sq * Sk * (D + Dv)
    bytes_accessed = int(
        q.size * q.dtype.itemsize
        + k.size * k.dtype.itemsize
        + v.size * v.dtype.itemsize
        + B * H * Sq * Dv * q.dtype.itemsize
    )

    out3 = pl.pallas_call(
        _attn_kernel,
        out_shape=jax.ShapeDtypeStruct((BH, Sq, Dv), q.dtype),
        grid_spec=pltpu.PrefetchScalarGridSpec(
            num_scalar_prefetch=0,
            grid=grid,
            in_specs=[
                # q tile is independent of the Sk-tile index -> no re-DMA over j.
                pl.BlockSpec((None, TQ, D), lambda g, i, j: (g, i, 0)),
                # k/v tiles are independent of the Sq-tile index.
                pl.BlockSpec((None, TK, D), lambda g, i, j: (g, j, 0)),
                pl.BlockSpec((None, TK, Dv), lambda g, i, j: (g, j, 0)),
            ],
            # Output block index constant across j -> stays resident while we
            # accumulate; written once at the last Sk tile.
            out_specs=pl.BlockSpec((None, TQ, Dv), lambda g, i, j: (g, i, 0)),
            scratch_shapes=[pltpu.VMEM((TQ, Dv), jnp.float32)],
        ),
        compiler_params=pltpu.CompilerParams(
            dimension_semantics=("parallel", "parallel", "arbitrary"),
            vmem_limit_bytes=48 * 1024 * 1024,
        ),
        cost_estimate=pl.CostEstimate(
            flops=flops, transcendentals=0, bytes_accessed=bytes_accessed
        ),
    )(q3, k3, v3)

    return out3.reshape(B, H, Sq, Dv)


if __name__ == "__main__":
    # Case 1: small deterministic inputs consistent with the module's 4-D matmul.
    B, H, Sq, Sk, D, Dv = 2, 4, 8, 8, 32, 32
    kq, kk, kv = jax.random.split(jax.random.PRNGKey(0), 3)
    q = jax.random.normal(kq, (B, H, Sq, D), dtype=jnp.float32)
    k = jax.random.normal(kk, (B, H, Sk, D), dtype=jnp.float32)
    v = jax.random.normal(kv, (B, H, Sk, Dv), dtype=jnp.float32)

    out = jax.block_until_ready(dot_product_attention(q, k, v))
    ref = jnp.matmul(jnp.matmul(q, jnp.swapaxes(k, 2, 3)), v)
    assert out.shape == (B, H, Sq, Dv)
    assert jnp.allclose(out, ref, atol=1e-4, rtol=1e-4)

    # Case 2: exercises the Sq/Sk tiling and the f32 accumulator path
    # (Sk = 1024 with TK = 512 -> 2 reduction steps per q tile).
    B2, H2, Sq2, Sk2, D2, Dv2 = 1, 2, 256, 1024, 64, 64
    kq2, kk2, kv2 = jax.random.split(jax.random.PRNGKey(1), 3)
    q2 = jax.random.normal(kq2, (B2, H2, Sq2, D2), dtype=jnp.float32)
    k2 = jax.random.normal(kk2, (B2, H2, Sk2, D2), dtype=jnp.float32)
    v2 = jax.random.normal(kv2, (B2, H2, Sk2, Dv2), dtype=jnp.float32)

    out2 = jax.block_until_ready(dot_product_attention(q2, k2, v2))
    ref2 = jnp.matmul(jnp.matmul(q2, jnp.swapaxes(k2, 2, 3)), v2)
    assert out2.shape == (B2, H2, Sq2, Dv2)
    assert jnp.allclose(out2, ref2, atol=1e-2, rtol=1e-3)

    print("KERNEL_OK")
</pallas_src>

<mosaic_0001>
module attributes {stable_mosaic.version = 11 : i64} {
  func.func @_attn_kernel(%arg0: i32, %arg1: i32, %arg2: i32, %arg3: memref<1x8x32xf32, #tpu.memory_space<vmem>>, %arg4: memref<1x8x32xf32, #tpu.memory_space<vmem>>, %arg5: memref<1x8x32xf32, #tpu.memory_space<vmem>>, %arg6: memref<1x8x32xf32, #tpu.memory_space<vmem>>, %arg7: memref<8x32xf32, #tpu.memory_space<vmem>>) attributes {dimension_semantics = [#tpu.dimension_semantics<parallel>, #tpu.dimension_semantics<parallel>, #tpu.dimension_semantics<arbitrary>], iteration_bounds = array<i64: 8, 1, 1>, scalar_prefetch = 0 : i64, scratch_operands = 1 : i64, tpu.core_type = #tpu.core_type<tc>, window_params = [{transform_indices = @transform_0, window_bounds = array<i64: 1, 8, 32>}, {transform_indices = @transform_1, window_bounds = array<i64: 1, 8, 32>}, {transform_indices = @transform_2, window_bounds = array<i64: 1, 8, 32>}, {transform_indices = @transform_3, window_bounds = array<i64: 1, 8, 32>}]} {
    %c0_i32 = arith.constant 0 : i32
    %0 = arith.cmpi eq, %arg2, %c0_i32 : i32
    %1 = arith.extui %0 : i1 to i32
    %c0_i32_0 = arith.constant 0 : i32
    %2 = arith.cmpi ne, %1, %c0_i32_0 : i32
    scf.if %2 {
      %cst_16 = arith.constant 0.000000e+00 : f32
      %17 = vector.broadcast %cst_16 : f32 to vector<8x32xf32>
      %c0_17 = arith.constant 0 : index
      %c0_18 = arith.constant 0 : index
      %18 = vector.load %arg7[%c0_17, %c0_18] : memref<8x32xf32, #tpu.memory_space<vmem>>, vector<8x32xf32>
      tpu.vector_store %arg7[%c0_17, %c0_18], %17 {strides = array<i32>} : memref<8x32xf32, #tpu.memory_space<vmem>>, vector<8x32xf32>,
    } else {
    }
    %c0 = arith.constant 0 : index
    %c0_1 = arith.constant 0 : index
    %c0_2 = arith.constant 0 : index
    %3 = vector.load %arg3[%c0, %c0_1, %c0_2] : memref<1x8x32xf32, #tpu.memory_space<vmem>>, vector<1x8x32xf32>
    %4 = vector.shape_cast %3 : vector<1x8x32xf32> to vector<8x32xf32>
    %c0_3 = arith.constant 0 : index
    %c0_4 = arith.constant 0 : index
    %c0_5 = arith.constant 0 : index
    %5 = vector.load %arg4[%c0_3, %c0_4, %c0_5] : memref<1x8x32xf32, #tpu.memory_space<vmem>>, vector<1x8x32xf32>
    %6 = vector.shape_cast %5 : vector<1x8x32xf32> to vector<8x32xf32>
    %c0_6 = arith.constant 0 : index
    %c0_7 = arith.constant 0 : index
    %c0_8 = arith.constant 0 : index
    %7 = vector.load %arg5[%c0_6, %c0_7, %c0_8] : memref<1x8x32xf32, #tpu.memory_space<vmem>>, vector<1x8x32xf32>
    %8 = vector.shape_cast %7 : vector<1x8x32xf32> to vector<8x32xf32>
    %cst = arith.constant dense<0.000000e+00> : vector<8x8xf32>
    %9 = tpu.matmul %4, %6, %cst {dimension_numbers = #tpu.dot_dimension_numbers<[1], [1], [0], [0], [0, 0, 1, 0], [], []>} : vector<8x32xf32>, vector<8x32xf32>, vector<8x8xf32> -> vector<8x8xf32>
    %c0_9 = arith.constant 0 : index
    %c0_10 = arith.constant 0 : index
    %10 = vector.load %arg7[%c0_9, %c0_10] : memref<8x32xf32, #tpu.memory_space<vmem>>, vector<8x32xf32>
    %cst_11 = arith.constant dense<0.000000e+00> : vector<8x32xf32>
    %11 = tpu.matmul %9, %8, %cst_11 {dimension_numbers = #tpu.dot_dimension_numbers<[1], [0], [0], [1], [0, 0, 1, 1], [], []>} : vector<8x8xf32>, vector<8x32xf32>, vector<8x32xf32> -> vector<8x32xf32>
    %12 = arith.addf %10, %11 : vector<8x32xf32>
    %c0_12 = arith.constant 0 : index
    %c0_13 = arith.constant 0 : index
    %13 = vector.load %arg7[%c0_12, %c0_13] : memref<8x32xf32, #tpu.memory_space<vmem>>, vector<8x32xf32>
    tpu.vector_store %arg7[%c0_12, %c0_13], %12 {strides = array<i32>} : memref<8x32xf32, #tpu.memory_space<vmem>>, vector<8x32xf32>,
    %c0_i32_14 = arith.constant 0 : i32
    %14 = arith.cmpi eq, %arg2, %c0_i32_14 : i32
    %15 = arith.extui %14 : i1 to i32
    %c0_i32_15 = arith.constant 0 : i32
    %16 = arith.cmpi ne, %15, %c0_i32_15 : i32
    scf.if %16 {
      %c0_16 = arith.constant 0 : index
      %c0_17 = arith.constant 0 : index
      %17 = vector.load %arg7[%c0_16, %c0_17] : memref<8x32xf32, #tpu.memory_space<vmem>>, vector<8x32xf32>
      %c0_18 = arith.constant 0 : index
      %c0_19 = arith.constant 0 : index
      %c0_20 = arith.constant 0 : index
      %18 = vector.load %arg6[%c0_18, %c0_19, %c0_20] : memref<1x8x32xf32, #tpu.memory_space<vmem>>, vector<1x8x32xf32>
      %19 = vector.shape_cast %18 : vector<1x8x32xf32> to vector<8x32xf32>
      %20 = vector.shape_cast %17 : vector<8x32xf32> to vector<1x8x32xf32>
      tpu.vector_store %arg6[%c0_18, %c0_19, %c0_20], %20 {strides = array<i32>} : memref<1x8x32xf32, #tpu.memory_space<vmem>>, vector<1x8x32xf32>,
    } else {
    }
    return
  }
  func.func @transform_0(%arg0: i32, %arg1: i32, %arg2: i32) -> (i32, i32, i32) {
    %c0_i32 = arith.constant 0 : i32
    %c0_i32_0 = arith.constant 0 : i32
    return %arg0, %arg1, %c0_i32 : i32, i32, i32
  }
  func.func @transform_1(%arg0: i32, %arg1: i32, %arg2: i32) -> (i32, i32, i32) {
    %c0_i32 = arith.constant 0 : i32
    %c0_i32_0 = arith.constant 0 : i32
    return %arg0, %arg2, %c0_i32 : i32, i32, i32
  }
  func.func @transform_2(%arg0: i32, %arg1: i32, %arg2: i32) -> (i32, i32, i32) {
    %c0_i32 = arith.constant 0 : i32
    %c0_i32_0 = arith.constant 0 : i32
    return %arg0, %arg2, %c0_i32 : i32, i32, i32
  }
  func.func @transform_3(%arg0: i32, %arg1: i32, %arg2: i32) -> (i32, i32, i32) {
    %c0_i32 = arith.constant 0 : i32
    %c0_i32_0 = arith.constant 0 : i32
    return %arg0, %arg1, %c0_i32 : i32, i32, i32
  }
}

</mosaic_0001>

<bundles_post_ra>
// kernel: tpu_custom_call.1
= control target key start
LH: loop header
LB: loop body
LE: loop exit
PB: predicated region body
PF: predicated region fallthrough
CT: control target
= control target key end

     0   :  { %s1179_s0 = inlined_call_operand.hbm [shape: f32[8,8,32], index: 0, kind: input, shape index: {}]   ;;  %s1180_s1 = inlined_call_operand.hbm [shape: f32[8,8,32], index: 1, kind: input, shape index: {}]   ;;  %s1181_s2 = inlined_call_operand.hbm [shape: f32[8,8,32], index: 2, kind: input, shape index: {}]   ;;  %s1182_s3 = inlined_call_operand.hbm [shape: f32[8,8,32], index: 3, kind: output, shape index: {}]  }
   0x1   :  { %1188 = sst [smem:[#allocation16_spill]] %s1180_s1 }
   0x2   :  { %8 = vsyncpa [#allocation4], 0 }
   0x3   :  { %10 = vsyncpa [#allocation4 + $0x1], 0 }
   0x4   :  { %11 = vsyncpa [#allocation7], 0 }
   0x5   :  { %13 = vsyncpa [#allocation7 + $0x1], 0 }
   0x6   :  { %14 = vsyncpa [#allocation5], 0 }
   0x7   :  { %16 = vsyncpa [#allocation5 + $0x1], 0  ;;  %s912_s12 = smov 0   ;;  %s914_s13 = smov 0  }
   0x8   :  { %s916_s14 = smov 0   ;;  %s918_s15 = smov 0  }
   0x9   :  { %s920_s16 = smov 0   ;;  %s922_s17 = smov 0  }
   0xa LB: > { %1189 = sst [smem:[#allocation13_spill]] %s880_s16  ;;  %s943_s18 = sadd.s32 4294967295, %s884_s17   ;;  %s884_s17 = sphi %s922_s17, %s22_s17   ;;  %s880_s16 = sphi %s920_s16, %s1209_s16   ;;  %s876_s15 = sphi %s918_s15, %s1208_s15   ;;  %s872_s14 = sphi %s916_s14, %s1212_s14   ;;  %s868_s13 = sphi %s914_s13, %s1211_s13   ;;  %s864_s12 = sphi %s912_s12, %s1210_s12  }
   0xb   : > { %s599_s19 = sadd.s32 4294967294, %s884_s17   ;;  %s41_s20 = sadd.s32 1, %s880_s16 }
   0xc   : > { %s50_s21 = sadd.s32 1, %s872_s14  ;;  %p43_p0 = scmp.ge.s32.totalorder %s41_s20, 8 }
   0xd   : > { %p57_p1 = scmp.ne.s32.totalorder %s872_s14, %s868_s13  ;;  %p58_p2 = scmp.eq.s32.totalorder %s884_s17, 0 }
   0xe   : > { %p63_p3 = scmp.ne.s32.totalorder %s868_s13, %s864_s12  ;;  %s1214_s20 = smov (%p43_p0, %s41_s20), 0 }
   0xf   : > { %1190 = sst [smem:[#allocation14_spill]] %s1214_s20  ;;  %p955_p4 = por %p58_p2, %p57_p1 }
  0x10   : > { %p64_p5 = scmp.eq.s32.totalorder %s943_s18, 0  ;;  %s45_s23 = ssub.s32 %s880_s16, %s1214_s20 }
  0x11   : > { %p145_p6 = scmp.eq.s32.totalorder %s943_s18, 7  ;;  %p48_p7 = scmp.eq.s32.totalorder %s45_s23, 0 }
  0x12   : > { %p963_p8 = por %p64_p5, %p63_p3  ;;  %p151_p10 = scmp.eq.s32.totalorder %s599_s19, 7 }
  0x13   : > { %p967_p9 = por %p145_p6, %p57_p1  ;;  %p656_p12 = scmp.lt.s32.totalorder %s884_s17, 8 }
  0x14   : > { %s1192_s24 = scalar_select %p963_p8, 1, 0 }
  0x15   : > { %s1193_s25 = scalar_select %p967_p9, 1, 0 }
  0x16   : > { %s972_s26 = scalar_select %p48_p7, %s872_s14, %s50_s21  }
  0x17   : > { %p974_p11 = por %p151_p10, %p63_p3  ;;  %s171_s28 = sand.u32 1, %s872_s14  }
  0x18   : > { %1194 = sst [smem:[#allocation15_spill]] %s972_s26  ;;  %s982_s29 = sshll.u32 %s171_s28, 3 }
  0x19   : > { %s1195_s27 = scalar_select %p974_p11, 1, 0 }
  0x1a   : > { %s985_s30 = sshll.u32 %s880_s16, 7  ;;  %p989_p13 = pnand %p656_p12, %p955_p4 }
  0x1b   : > { %s190_s5 = sand.u32 1, %s884_s17   ;;  %s1197_s1 = sld [smem:[#allocation16_spill]] }
  0x1c   : > { %s1196_s4 = scalar_select %p989_p13, 1, 0 }
  0x1d   : > { %s194_s9 = scalar_lea.vmem [#allocation6], %s982_s29  ;;  %s1005_s11 = scalar_lea.sflag [#allocation7], %s190_s5 }
  0x1e   : > { %s202_s10 = sshll.u32 %s194_s9, 4  ;;  %p1011_p3 = pneg %p989_p13  ;;  %s1002_s10 = int_to_ptr.vmem [resolvable:$true] %s202_s10 }
  0x21   : > { %s998_s8 = scalar_lea.hbm %s1197_s1, %s985_s30  ;;  %s713_s6 = scalar_lea.hbm %s1197_s1, 1024 }
  0x22   : > { %s708_s19 = scalar_lea.hbm %s998_s8, 128  ;;  %p714_p6 = scmp.lt.u32.totalorder %s998_s8, %s1197_s1 }
  0x23   : > { %p709_p2 = scmp.ne.s32.totalorder %s998_s8, %s708_s19  ;;  %p715_p7 = scmp.lt.u32.totalorder %s713_s6, %s708_s19 }
  0x24   : > { %p717_p12 = scmp.lt.u32.totalorder %s708_s19, %s998_s8 }
  0x25   : > { %p711_p4 = pnand %p1011_p3, %p709_p2  ;;  %p716_p10 = por %p715_p7, %p714_p6 }
  0x27   : > { %p712_p5 = pneg %p711_p4  ;;  %p718_p0 = por %p717_p12, %p716_p10 }
  0x29   : > { %p719_p1 = pnand %p718_p0, %p712_p5 }
  0x2b   : > { %722 = shalt.err (!%p719_p1)
}
  0x2c   : > { %s723_s5 = scalar_lea.vmem %s1002_s10, 128  ;;  %s886_s22 = smov [#allocation6]  }
  0x2d   : > { %p724_p2 = scmp.ne.s32.totalorder %s1002_s10, %s723_s5  ;;  %s728_s23 = sshll.u32 %s886_s22, 4  ;;  %s729_s23 = int_to_ptr.vmem [resolvable:$false] %s728_s23 }
  0x2e   : > { %s730_s7 = scalar_lea.vmem %s729_s23, 256  ;;  %p731_p9 = scmp.lt.s32.totalorder %s1002_s10, %s729_s23 }
  0x2f   : > { %p726_p4 = pnand %p724_p2, %p1011_p3  ;;  %p732_p8 = scmp.lt.s32.totalorder %s730_s7, %s723_s5 }
  0x31   : > { %p727_p11 = pneg %p726_p4  ;;  %p733_p6 = por %p732_p8, %p731_p9 }
  0x33   : > { %p734_p7 = pnand %p733_p6, %p727_p11 }
  0x35   : > { %737 = shalt.err (!%p734_p7)
}
  0x36   : > { %648 = dma.hbm_to_vmem [thread:$0]  (!%p989_p13), %s998_s8, 128, %s1002_s10, %s1005_s11  }
  0x37   : > { %p1199_p0 = scmp.lt.s32.totalorder %s884_s17, 9  ;;  %p1200_p1 = scmp.ge.s32.totalorder %s884_s17, 1 }
  0x38   : > { %s1047_s5 = scalar_lea.hbm %s1179_s0, %s985_s30  ;;  %s175_s22 = scalar_lea.vmem [#allocation3], %s982_s29 }
  0x39   : > { %p1039_p5 = pnand %p1200_p1, %p1199_p0  ;;  %s183_s23 = sshll.u32 %s175_s22, 4  ;;  %s1050_s23 = int_to_ptr.vmem [resolvable:$true] %s183_s23 }
  0x3a   : > { %s1056_s7 = scalar_lea.hbm %s1181_s2, %s985_s30  ;;  %s172_s1 = scalar_lea.sflag [#allocation4], %s171_s28 }
  0x3b   : > { %s1201_s19 = scalar_select %p1039_p5, 1, 0 }
  0x3c   : > { %s738_s20 = scalar_lea.hbm %s1047_s5, 128  ;;  %s743_s16 = scalar_lea.hbm %s1179_s0, 1024 }
  0x3d   : > { %p739_p8 = scmp.ne.s32.totalorder %s1047_s5, %s738_s20  ;;  %p744_p10 = scmp.lt.u32.totalorder %s1047_s5, %s1179_s0 }
  0x3e   : > { %p745_p12 = scmp.lt.u32.totalorder %s743_s16, %s738_s20  ;;  %p747_p4 = scmp.lt.u32.totalorder %s738_s20, %s1047_s5 }
  0x3f   : > { %p741_p9 = pnand %p739_p8, %p1011_p3 }
  0x40   : > { %p746_p2 = por %p745_p12, %p744_p10 }
  0x41   : > { %p742_p11 = pneg %p741_p9 }
  0x42   : > { %p748_p6 = por %p747_p4, %p746_p2 }
  0x44   : > { %p749_p7 = pnand %p748_p6, %p742_p11 }
  0x46   : > { %752 = shalt.err (!%p749_p7)
}
  0x47   : > { %s753_s28 = scalar_lea.vmem %s1050_s23, 128  ;;  %s887_s30 = smov [#allocation3]  }
  0x48   : > { %p754_p0 = scmp.ne.s32.totalorder %s1050_s23, %s753_s28  ;;  %s758_s8 = sshll.u32 %s887_s30, 4  ;;  %s759_s8 = int_to_ptr.vmem [resolvable:$false] %s758_s8 }
  0x49   : > { %s760_s26 = scalar_lea.vmem %s759_s8, 256  ;;  %p761_p9 = scmp.lt.s32.totalorder %s1050_s23, %s759_s8 }
  0x4a   : > { %p756_p1 = pnand %p754_p0, %p1011_p3  ;;  %p762_p5 = scmp.lt.s32.totalorder %s760_s26, %s753_s28 }
  0x4c   : > { %p757_p8 = pneg %p756_p1  ;;  %p763_p10 = por %p762_p5, %p761_p9 }
  0x4e   : > { %p764_p12 = pnand %p763_p10, %p757_p8 }
  0x50   : > { %767 = shalt.err (!%p764_p12)
}
  0x51   : > { %645 = dma.hbm_to_vmem [thread:$0]  (!%p989_p13), %s1047_s5, 128, %s1050_s23, %s172_s1  }
  0x52   : > { %s213_s16 = scalar_lea.vmem [#allocation8], %s982_s29  ;;  %s768_s10 = scalar_lea.hbm %s1056_s7, 128 }
  0x53   : > { %s221_s20 = sshll.u32 %s213_s16, 4  ;;  %p769_p11 = scmp.ne.s32.totalorder %s1056_s7, %s768_s10  ;;  %s222_s20 = int_to_ptr.vmem [resolvable:$true] %s221_s20 }
  0x54   : > { %s773_s22 = scalar_lea.hbm %s1181_s2, 1024  ;;  %p774_p4 = scmp.lt.u32.totalorder %s1056_s7, %s1181_s2 }
  0x55   : > { %p771_p5 = pnand %p769_p11, %p1011_p3  ;;  %p775_p6 = scmp.lt.u32.totalorder %s773_s22, %s768_s10 }
  0x56   : > { %p777_p0 = scmp.lt.u32.totalorder %s768_s10, %s1056_s7 }
  0x57   : > { %p772_p2 = pneg %p771_p5  ;;  %p776_p7 = por %p775_p6, %p774_p4 }
  0x59   : > { %p778_p1 = por %p777_p0, %p776_p7 }
  0x5b   : > { %p779_p8 = pnand %p778_p1, %p772_p2 }
  0x5d   : > { %782 = shalt.err (!%p779_p8)
}
  0x5e   : > { %s783_s1 = scalar_lea.vmem %s222_s20, 128  ;;  %s888_s29 = smov [#allocation8]  }
  0x5f   : > { %p784_p9 = scmp.ne.s32.totalorder %s222_s20, %s783_s1  ;;  %s788_s5 = sshll.u32 %s888_s29, 4  ;;  %s789_s5 = int_to_ptr.vmem [resolvable:$false] %s788_s5 }
  0x60   : > { %s790_s23 = scalar_lea.vmem %s789_s5, 256  ;;  %p791_p11 = scmp.lt.s32.totalorder %s222_s20, %s789_s5 }
  0x61   : > { %p786_p10 = pnand %p784_p9, %p1011_p3  ;;  %p792_p5 = scmp.lt.s32.totalorder %s790_s23, %s783_s1 }
  0x63   : > { %p787_p12 = pneg %p786_p10  ;;  %p793_p13 = por %p792_p5, %p791_p11 }
  0x65   : > { %p794_p4 = pnand %p793_p13, %p787_p12 }
  0x67   : > { %797 = shalt.err (!%p794_p4)
}
  0x68   : > { %p1202_p6 = scmp.ne.s32.totalorder %s1196_s4, 0  ;;  %p1203_p2 = scmp.ne.s32.totalorder %s1201_s19, 0 }
  0x69   : > { %s1103_s21 = sand.u32 (!%p1203_p2), 1, %s868_s13   ;;  %p1204_p13 = scmp.ne.s32.totalorder (!%p1203_p2), %s1192_s24, 0 }
  0x6a   : > { %651 = dma.hbm_to_vmem [thread:$0]  (!%p1202_p6), %s1056_s7, 128, %s222_s20, %s1005_s11  }
  0x6b   : > { %230 = sbr.rel (%p1203_p2) target bundleno = 572 (0x23c), region = 32  ;;  %s1106_s8 = sshll.u32 (!%p1203_p2), %s1103_s21, 3 }
  0x6c   : > { %s233_s26 = scalar_lea.sflag (!%p1203_p2), [#allocation4], %s1103_s21  ;;  %s236_s16 = scalar_lea.vmem (!%p1203_p2), [#allocation3], %s1106_s8 }
  0x72   : > { %851 = dma.done.wait (%p1204_p13), %s233_s26, 128  }
  0x73   : > { %853 = vsyncadd (%p1204_p13), %s233_s26, 4294967168  ;;  %s241_s4 = sand.u32 1, %s943_s18   ;;  %s245_s19 = scalar_lea.vmem [#allocation6], %s1106_s8 }
  0x74   : > { %s242_s11 = scalar_lea.sflag [#allocation7], %s241_s4 }
  0x75   : > { %855 = dma.done.wait (%p1204_p13), %s242_s11, 256  }
  0x76   : > { %857 = vsyncadd (%p1204_p13), %s242_s11, 4294967040  ;;  %vm291_vm0 = vcmask 261120   ;;  %v889_v0 = vmov 0.0   ;;  %vm890_vm1 = vmmov 0   ;;  %v294_v1 = vld [vmem:[%s245_s19] sm:$0xff]  ;;  %v293_v2 = vld [vmem:[%s236_s16] sm:$0xff] }
  0x77   : > { %624 = vmatprep.subr.mxu0 %v889_v0  ;;  %292 = vst.msk [vmem:[#allocation2] sm:$0xff] %vm291_vm0, %v889_v0  ;;  %626 = vmatprep.mubr.msk.f32.mxu0 %vm890_vm1, %v889_v0  ;;  %s254_s18 = scalar_lea.vmem [#allocation8], %s1106_s8  ;;  %vm374_vm2 = vcmask 64512   ;;  %s617_s24 = sshll.u32 %s876_s15, 7 }
  0x78   : > { %629 = vmatprep.subr.mxu1 %v889_v0  ;;  %631 = vmatprep.mubr.msk.f32.mxu1 %vm890_vm1, %v889_v0  ;;  %v295_v3 = vld [vmem:[%s254_s18] sm:$0xff]  ;;  %s286_s7 = scalar_lea.vmem [#allocation9], %s1106_s8  ;;  %s1130_s9 = scalar_lea.hbm %s1182_s3, %s617_s24 }
  0x79   : > { %625 = vmatpush3.xpose.msk.msra.mxu0 %vm291_vm0, %v294_v1  ;;  %630 = vmatpush3.msra.mxu1 %v295_v3  ;;  %s470_s20 = sshll.u32 %s286_s7, 4  ;;  %s456_s22 = scalar_lea.sflag [#allocation5], %s1103_s21  ;;  %s1132_s20 = int_to_ptr.vmem [resolvable:$true] %s470_s20 }
  0x7a   : > { %s798_s28 = scalar_lea.vmem %s1132_s20, 128  ;;  %p1205_p7 = scmp.ne.s32.totalorder %s1193_s25, 0 }
  0x7b   : > { %p799_p3 = scmp.ne.s32.totalorder %s1132_s20, %s798_s28  ;;  %s891_s15 = smov [#allocation9]  }
  0x7c   : > { %627 = vmatmul.mubr.msk.f32.vlgmr.msra.gmra.mrb[0].mxu0 %vm291_vm0, %v293_v2  ;;  %s802_s30 = sshll.u32 %s891_s15, 4  ;;  %s803_s30 = int_to_ptr.vmem [resolvable:$false] %s802_s30 }
  0x7d   : > { %p800_p0 = pnand %p799_p3, %p1205_p7  ;;  %s804_s1 = scalar_lea.vmem %s803_s30, 256 }
  0x7e   : > { %v373_v6 = vld [vmem:[#allocation2] sm:$0xff]  ;;  %p805_p8 = scmp.lt.s32.totalorder %s1132_s20, %s803_s30  ;;  %p806_p9 = scmp.lt.s32.totalorder %s804_s1, %s798_s28 }
  0x7f   : > { %p801_p1 = pneg %p800_p0 }
  0x80   : > { %p807_p10 = por %p806_p9, %p805_p8 }
  0x82   : > { %p808_p12 = pnand %p807_p10, %p801_p1 }
 0x14f   : > { %v369_v4 = vpop.f32.mrb[0].mxu0 }
 0x150   : > { %v628_v5 = vpop.f32.mrb[1].mxu0  ;;  %632 = vmatmul.mubr.msk.f32.vlgmr.msra.gmra.mrb[0].mxu1 %vm374_vm2, %v369_v4 }
 0x223   : > { %v444_v7 = vpop.f32.mrb[0].mxu1 }
 0x224   : > { %v448_v8 = vadd.f32 %v444_v7, %v373_v6  ;;  %v633_v9 = vpop.f32.mrb[1].mxu1 }
 0x226   : > { %449 = vst.msk [vmem:[#allocation2] sm:$0xff] %vm291_vm0, %v448_v8 }
 0x22d   : > { %v453_v10 = vld [vmem:[#allocation2] sm:$0xff] }
 0x22e   : > { %454 = vst.msk [vmem:[%s286_s7] sm:$0xff] %vm291_vm0, %v453_v10 }
 0x22f   : > { %811 = shalt.err (!%p808_p12)
}
 0x230   : > { %s812_s29 = scalar_lea.hbm %s1130_s9, 128  ;;  %s816_s21 = scalar_lea.hbm %s1182_s3, 1024 }
 0x231   : > { %p813_p11 = scmp.ne.s32.totalorder %s1130_s9, %s812_s29  ;;  %p817_p6 = scmp.lt.u32.totalorder %s1130_s9, %s1182_s3 }
 0x232   : > { %p818_p2 = scmp.lt.u32.totalorder %s816_s21, %s812_s29  ;;  %p820_p3 = scmp.lt.u32.totalorder %s812_s29, %s1130_s9 }
 0x233   : > { %p814_p5 = pnand %p813_p11, %p1205_p7 }
 0x234   : > { %p819_p13 = por %p818_p2, %p817_p6 }
 0x235   : > { %p815_p4 = pneg %p814_p5 }
 0x236   : > { %p821_p0 = por %p820_p3, %p819_p13 }
 0x238   : > { %p822_p1 = pnand %p821_p0, %p815_p4 }
 0x23a   : > { %825 = shalt.err (!%p822_p1)
}
 0x23b   : > { %640 = dma.vmem_to_hbm [thread:$0]  (%p1205_p7), %s1132_s20, 128, %s1130_s9, %s456_s22  }
 0x23c PF: > { %p657_p8 = scmp.ge.s32.totalorder %s884_s17, 2  ;;  %s482_s16 = sand.u32 1, %s864_s12  }
 0x23d   : > { %p1206_p9 = scmp.ne.s32.totalorder %s1195_s27, 0  ;;  %s483_s4 = scalar_lea.sflag [#allocation5], %s482_s16 }
 0x23f   : > { %p653_p10 = pnand %p657_p8, %p1206_p9 }
 0x241   : > { %859 = dma.done.wait (!%p653_p10), %s483_s4, 128  }
 0x242   : > { %861 = vsyncadd (!%p653_p10), %s483_s4, 4294967168  ;;  %s22_s17 = sadd.s32 1, %s884_s17   ;;  %s1207_s25 = sld [smem:[#allocation15_spill]] }
 0x243   : > { %p19_p12 = scmp.ge.s32.totalorder %s22_s17, 10   ;;  %s1208_s15 = sld [smem:[#allocation13_spill]] }
 0x244   : > { %s1209_s16 = sld [smem:[#allocation14_spill]]  ;;  %s1210_s12 = smov %s868_s13 }
 0x245   : > { %s1211_s13 = smov %s872_s14  ;;  %21 = sbr.rel (!%p19_p12) target bundleno = 10 (0xa), region = 109 }
 0x248   : > { %s1212_s14 = smov %s1207_s25 }
 0x24c   :  { %488 = vsyncpa [#allocation4], 1 }
 0x24d   :  { %490 = vsyncpa [#allocation4 + $0x1], 1 }
 0x24e   :  { %491 = vsyncpa [#allocation7], 1 }
 0x24f   :  { %493 = vsyncpa [#allocation7 + $0x1], 1 }
 0x250   :  { %494 = vsyncpa [#allocation5], 1 }
 0x251   :  { %496 = vsyncpa [#allocation5 + $0x1], 1 }

</bundles_post_ra>
